<compile_context>
chip_gen: v7x
topology: tpu7x:2x2x1
jax: 0.10.0
libtpu: 0.0.40
codegen_flags: <defaults>
</compile_context>

<pallas_src>
import functools

import jax
import jax.numpy as jnp
from jax.experimental import pallas as pl
from jax.experimental.pallas import tpu as pltpu


# ------------------------------ kernel bodies -------------------------------

def _pool_kernel(x_ref, o_ref, *, ts, S, inv_s, mask_cols):
    """Accumulate the spatial mean of each row into o_ref (block shape (tm, 1))."""
    j = pl.program_id(1)

    @pl.when(j == 0)
    def _init():
        o_ref[...] = jnp.zeros_like(o_ref)

    x = x_ref[...].astype(jnp.float32)                       # (tm, ts)
    if mask_cols:  # zero out columns past S in the last spatial block
        col = jax.lax.broadcasted_iota(jnp.int32, x.shape, 1) + j * ts
        x = jnp.where(col < S, x, 0.0)
    o_ref[...] = o_ref[...] + jnp.sum(x, axis=1, keepdims=True)

    @pl.when(j == pl.num_programs(1) - 1)
    def _finalize():
        o_ref[...] = o_ref[...] * inv_s


def _attn_kernel(pp_ref, w_ref, o_ref, *, k, C):
    """gate = sigmoid(k-tap conv over channels of the pooled means).

    pp_ref: (N, C + k - 1) zero-padded pooled means (f32, VMEM).
    w_ref : (k,) conv taps (f32, SMEM scalars).
    o_ref : (N, C) gate (f32, VMEM).
    """
    acc = jnp.zeros((pp_ref.shape[0], C), jnp.float32)
    for t in range(k):                       # static, unrolled: shifted slices
        acc = acc + w_ref[t] * pp_ref[:, t:t + C].astype(jnp.float32)
    o_ref[...] = jax.nn.sigmoid(acc)


def _scale_kernel(x_ref, g_ref, o_ref):
    """out = x * per-row gate, broadcast along the lane (spatial) axis."""
    x = x_ref[...].astype(jnp.float32)                       # (tm, ts)
    g = g_ref[...]                                           # (tm, 1) f32
    o_ref[...] = (x * g).astype(o_ref.dtype)


# ------------------------------ pallas wrappers ------------------------------

_VMEM = pl.BlockSpec(memory_space=pltpu.MemorySpace.VMEM)
_SMEM = pl.BlockSpec(memory_space=pltpu.MemorySpace.SMEM)


def _pick_tiles(M, S, *, tm_target=256, ts_target=2048):
    # Block dims must be multiples of (8, 128) or equal to the full dims.
    # tm=256 / ts=2048 -> 2 MiB f32 blocks; with double-buffered in/out blocks
    # the scale pass peaks around ~8 MiB VMEM -- within the v5e 16 MiB scoped
    # default and well under v6e/v7x limits, while keeping per-step grid
    # overhead (~0.35 us/step) negligible.
    tm = M if M <= tm_target else tm_target
    ts = S if S <= ts_target else ts_target
    return tm, ts


def eca_forward(x_nchw, conv_w, *, tm_target=256, ts_target=2048):
    """ECA layer forward. x_nchw: (N, C, H, W); conv_w: Conv1d taps (any shape, k elems)."""
    N, C, H, W = x_nchw.shape
    conv_w = jnp.asarray(conv_w).reshape(-1).astype(jnp.float32)
    k = int(conv_w.shape[0])
    pad = (k - 1) // 2
    M, S = N * C, H * W
    x2d = x_nchw.reshape(M, S)                 # contiguous view, free

    tm, ts = _pick_tiles(M, S, tm_target=tm_target, ts_target=ts_target)
    grid = (pl.cdiv(M, tm), pl.cdiv(S, ts))

    # ---- pass 1: pooled row means (M, 1), f32 -------------------------------
    pooled = pl.pallas_call(
        functools.partial(_pool_kernel, ts=ts, S=S, inv_s=1.0 / S,
                          mask_cols=(S % ts != 0)),
        out_shape=jax.ShapeDtypeStruct((M, 1), jnp.float32),
        grid=grid,
        in_specs=[pl.BlockSpec((tm, ts), lambda i, j: (i, j))],
        out_specs=pl.BlockSpec((tm, 1), lambda i, j: (i, 0)),  # resident accumulator
        compiler_params=pltpu.CompilerParams(
            dimension_semantics=("parallel", "arbitrary")),
    )(x2d)

    # ---- pass 2: channel gate (tiny: N*C values) ----------------------------
    # Zero-pad the channel axis of the (N, C) pooled vector in the wrapper
    # (pure layout plumbing on a tiny tensor); the k-tap conv + sigmoid run
    # inside the kernel as shifted slices -- no O(C^2) Toeplitz weight.
    pooled_padded = jnp.pad(pooled.reshape(N, C), ((0, 0), (pad, pad)))
    gate = pl.pallas_call(
        functools.partial(_attn_kernel, k=k, C=C),
        out_shape=jax.ShapeDtypeStruct((N, C), jnp.float32),
        in_specs=[_VMEM, _SMEM],
        out_specs=_VMEM,
    )(pooled_padded, conv_w)

    # ---- pass 3: rescale x by its per-(n, c) gate ---------------------------
    out2d = pl.pallas_call(
        _scale_kernel,
        out_shape=jax.ShapeDtypeStruct((M, S), x_nchw.dtype),
        grid=grid,
        in_specs=[pl.BlockSpec((tm, ts), lambda i, j: (i, j)),
                  pl.BlockSpec((tm, 1), lambda i, j: (i, 0))],
        out_specs=pl.BlockSpec((tm, ts), lambda i, j: (i, j)),
        compiler_params=pltpu.CompilerParams(
            dimension_semantics=("parallel", "parallel")),
    )(x2d, gate.reshape(M, 1))

    return out2d.reshape(N, C, H, W)


# ------------------------------- JAX reference -------------------------------

def eca_reference(x_nchw, conv_w):
    """Pure-JAX reference matching the PyTorch eca_layer exactly."""
    N, C, H, W = x_nchw.shape
    conv_w = jnp.asarray(conv_w).reshape(-1).astype(jnp.float32)
    k = conv_w.shape[0]
    pad = (k - 1) // 2
    xf = x_nchw.astype(jnp.float32)
    pooled = jnp.mean(xf, axis=(2, 3))                        # (N, C)
    pp = jnp.pad(pooled, ((0, 0), (pad, pad)))
    conv = sum(conv_w[t] * pp[:, t:t + C] for t in range(k))  # = nn.Conv1d (xcorr)
    gate = jax.nn.sigmoid(conv)
    return (xf * gate[:, :, None, None]).astype(x_nchw.dtype)


# ----------------------------------- main ------------------------------------

if __name__ == "__main__":
    key = jax.random.PRNGKey(0)
    kx, kw, kx2 = jax.random.split(key, 3)

    eca = jax.jit(eca_forward)

    # Shapes consistent with the module: batch=2, channels=4, spatial=16, k=3.
    x = jax.random.normal(kx, (2, 4, 16, 16), jnp.float32)        # NCHW
    conv_w = 0.5 * jax.random.normal(kw, (3,), jnp.float32)       # Conv1d(1,1,3).weight.view(-1)

    out = jax.block_until_ready(eca(x, conv_w))
    ref = eca_reference(x, conv_w)
    assert out.shape == x.shape and out.dtype == x.dtype
    err = float(jnp.max(jnp.abs(out - ref)))
    assert err < 1e-5, f"kernel/reference mismatch: {err}"

    # Second shape exercising the tiled path: multi-block grid with a row
    # remainder (M=320 -> tm=256) and full-S spatial blocks (S=1600 <= 2048).
    x2 = jax.random.normal(kx2, (2, 160, 40, 40), jnp.float32)
    out2 = jax.block_until_ready(eca(x2, conv_w))
    ref2 = eca_reference(x2, conv_w)
    err2 = float(jnp.max(jnp.abs(out2 - ref2)))
    assert err2 < 1e-5, f"kernel/reference mismatch (tiled): {err2}"

    print("KERNEL_OK")
</pallas_src>

<mosaic_0001>
module attributes {stable_mosaic.version = 11 : i64} {
  func.func @_pool_kernel(%arg0: i32, %arg1: i32, %arg2: memref<8x256xf32, #tpu.memory_space<vmem>>, %arg3: memref<8x1xf32, #tpu.memory_space<vmem>>) attributes {dimension_semantics = [#tpu.dimension_semantics<parallel>, #tpu.dimension_semantics<arbitrary>], iteration_bounds = array<i64: 1, 1>, scalar_prefetch = 0 : i64, scratch_operands = 0 : i64, tpu.core_type = #tpu.core_type<tc>, window_params = [{transform_indices = @transform_0, window_bounds = array<i64: 8, 256>}, {transform_indices = @transform_1, window_bounds = array<i64: 8, 1>}]} {
    %c0_i32 = arith.constant 0 : i32
    %0 = arith.cmpi eq, %arg1, %c0_i32 : i32
    %1 = arith.extui %0 : i1 to i32
    %c0_i32_0 = arith.constant 0 : i32
    %2 = arith.cmpi ne, %1, %c0_i32_0 : i32
    scf.if %2 {
      %cst_8 = arith.constant 0.000000e+00 : f32
      %12 = vector.broadcast %cst_8 : f32 to vector<8x1xf32>
      %c0_9 = arith.constant 0 : index
      %c0_10 = arith.constant 0 : index
      %13 = vector.load %arg3[%c0_9, %c0_10] : memref<8x1xf32, #tpu.memory_space<vmem>>, vector<8x1xf32>
      tpu.vector_store %arg3[%c0_9, %c0_10], %12 {strides = array<i32>} : memref<8x1xf32, #tpu.memory_space<vmem>>, vector<8x1xf32>,
    } else {
    }
    %c0 = arith.constant 0 : index
    %c0_1 = arith.constant 0 : index
    %3 = vector.load %arg2[%c0, %c0_1] : memref<8x256xf32, #tpu.memory_space<vmem>>, vector<8x256xf32>
    %c0_2 = arith.constant 0 : index
    %c0_3 = arith.constant 0 : index
    %4 = vector.load %arg3[%c0_2, %c0_3] : memref<8x1xf32, #tpu.memory_space<vmem>>, vector<8x1xf32>
    %cst = arith.constant dense<0.000000e+00> : vector<8xf32>
    %5 = vector.multi_reduction <add>, %3, %cst [1] : vector<8x256xf32> to vector<8xf32>
    %6 = vector.shape_cast %5 : vector<8xf32> to vector<8x1xf32>
    %7 = arith.addf %4, %6 : vector<8x1xf32>
    %c0_4 = arith.constant 0 : index
    %c0_5 = arith.constant 0 : index
    %8 = vector.load %arg3[%c0_4, %c0_5] : memref<8x1xf32, #tpu.memory_space<vmem>>, vector<8x1xf32>
    tpu.vector_store %arg3[%c0_4, %c0_5], %7 {strides = array<i32>} : memref<8x1xf32, #tpu.memory_space<vmem>>, vector<8x1xf32>,
    %c0_i32_6 = arith.constant 0 : i32
    %9 = arith.cmpi eq, %arg1, %c0_i32_6 : i32
    %10 = arith.extui %9 : i1 to i32
    %c0_i32_7 = arith.constant 0 : i32
    %11 = arith.cmpi ne, %10, %c0_i32_7 : i32
    scf.if %11 {
      %c0_8 = arith.constant 0 : index
      %c0_9 = arith.constant 0 : index
      %12 = vector.load %arg3[%c0_8, %c0_9] : memref<8x1xf32, #tpu.memory_space<vmem>>, vector<8x1xf32>
      %cst_10 = arith.constant 3.906250e-03 : f32
      %13 = vector.broadcast %cst_10 : f32 to vector<8x1xf32>
      %14 = arith.mulf %12, %13 : vector<8x1xf32>
      %c0_11 = arith.constant 0 : index
      %c0_12 = arith.constant 0 : index
      %15 = vector.load %arg3[%c0_11, %c0_12] : memref<8x1xf32, #tpu.memory_space<vmem>>, vector<8x1xf32>
      tpu.vector_store %arg3[%c0_11, %c0_12], %14 {strides = array<i32>} : memref<8x1xf32, #tpu.memory_space<vmem>>, vector<8x1xf32>,
    } else {
    }
    return
  }
  func.func @transform_0(%arg0: i32, %arg1: i32) -> (i32, i32) {
    %c0_i32 = arith.constant 0 : i32
    return %arg0, %arg1 : i32, i32
  }
  func.func @transform_1(%arg0: i32, %arg1: i32) -> (i32, i32) {
    %c0_i32 = arith.constant 0 : i32
    %c0_i32_0 = arith.constant 0 : i32
    return %arg0, %c0_i32 : i32, i32
  }
}

module attributes {stable_mosaic.version = 11 : i64} {
  func.func @_attn_kernel(%arg0: memref<2x6xf32, #tpu.memory_space<vmem>>, %arg1: memref<3xf32, #tpu.memory_space<smem>>, %arg2: memref<2x4xf32, #tpu.memory_space<vmem>>) attributes {dimension_semantics = [], scalar_prefetch = 0 : i64, scratch_operands = 0 : i64, tpu.core_type = #tpu.core_type<tc>} {
    %cst = arith.constant 0.000000e+00 : f32
    %0 = vector.broadcast %cst : f32 to vector<2x4xf32>
    %c0 = arith.constant 0 : index
    %1 = memref.load %arg1[%c0] : memref<3xf32, #tpu.memory_space<smem>>
    %c0_0 = arith.constant 0 : index
    %c0_1 = arith.constant 0 : index
    %2 = vector.load %arg0[%c0_0, %c0_1] : memref<2x6xf32, #tpu.memory_space<vmem>>, vector<2x4xf32>
    %3 = vector.broadcast %1 : f32 to vector<2x4xf32>
    %4 = arith.mulf %3, %2 : vector<2x4xf32>
    %5 = arith.addf %0, %4 : vector<2x4xf32>
    %c1 = arith.constant 1 : index
    %6 = memref.load %arg1[%c1] : memref<3xf32, #tpu.memory_space<smem>>
    %c0_2 = arith.constant 0 : index
    %c1_3 = arith.constant 1 : index
    %7 = vector.load %arg0[%c0_2, %c1_3] : memref<2x6xf32, #tpu.memory_space<vmem>>, vector<2x4xf32>
    %8 = vector.broadcast %6 : f32 to vector<2x4xf32>
    %9 = arith.mulf %8, %7 : vector<2x4xf32>
    %10 = arith.addf %5, %9 : vector<2x4xf32>
    %c2 = arith.constant 2 : index
    %11 = memref.load %arg1[%c2] : memref<3xf32, #tpu.memory_space<smem>>
    %c0_4 = arith.constant 0 : index
    %c2_5 = arith.constant 2 : index
    %12 = vector.load %arg0[%c0_4, %c2_5] : memref<2x6xf32, #tpu.memory_space<vmem>>, vector<2x4xf32>
    %13 = vector.broadcast %11 : f32 to vector<2x4xf32>
    %14 = arith.mulf %13, %12 : vector<2x4xf32>
    %15 = arith.addf %10, %14 : vector<2x4xf32>
    %16 = arith.negf %15 : vector<2x4xf32>
    %17 = math.exp %16 : vector<2x4xf32>
    %cst_6 = arith.constant 1.000000e+00 : f32
    %18 = vector.broadcast %cst_6 : f32 to vector<2x4xf32>
    %19 = arith.addf %18, %17 : vector<2x4xf32>
    %20 = arith.divf %18, %19 : vector<2x4xf32>
    %c0_7 = arith.constant 0 : index
    %c0_8 = arith.constant 0 : index
    %21 = vector.load %arg2[%c0_7, %c0_8] : memref<2x4xf32, #tpu.memory_space<vmem>>, vector<2x4xf32>
    tpu.vector_store %arg2[%c0_7, %c0_8], %20 {strides = array<i32>} : memref<2x4xf32, #tpu.memory_space<vmem>>, vector<2x4xf32>,
    return
  }
}

module attributes {stable_mosaic.version = 11 : i64} {
  func.func @_scale_kernel(%arg0: i32, %arg1: i32, %arg2: memref<8x256xf32, #tpu.memory_space<vmem>>, %arg3: memref<8x1xf32, #tpu.memory_space<vmem>>, %arg4: memref<8x256xf32, #tpu.memory_space<vmem>>) attributes {dimension_semantics = [#tpu.dimension_semantics<parallel>, #tpu.dimension_semantics<parallel>], iteration_bounds = array<i64: 1, 1>, scalar_prefetch = 0 : i64, scratch_operands = 0 : i64, tpu.core_type = #tpu.core_type<tc>, window_params = [{transform_indices = @transform_0, window_bounds = array<i64: 8, 256>}, {transform_indices = @transform_1, window_bounds = array<i64: 8, 1>}, {transform_indices = @transform_2, window_bounds = array<i64: 8, 256>}]} {
    %c0 = arith.constant 0 : index
    %c0_0 = arith.constant 0 : index
    %0 = vector.load %arg2[%c0, %c0_0] : memref<8x256xf32, #tpu.memory_space<vmem>>, vector<8x256xf32>
    %c0_1 = arith.constant 0 : index
    %c0_2 = arith.constant 0 : index
    %1 = vector.load %arg3[%c0_1, %c0_2] : memref<8x1xf32, #tpu.memory_space<vmem>>, vector<8x1xf32>
    %2 = vector.broadcast %1 : vector<8x1xf32> to vector<8x256xf32>
    %3 = arith.mulf %0, %2 : vector<8x256xf32>
    %c0_3 = arith.constant 0 : index
    %c0_4 = arith.constant 0 : index
    %4 = vector.load %arg4[%c0_3, %c0_4] : memref<8x256xf32, #tpu.memory_space<vmem>>, vector<8x256xf32>
    tpu.vector_store %arg4[%c0_3, %c0_4], %3 {strides = array<i32>} : memref<8x256xf32, #tpu.memory_space<vmem>>, vector<8x256xf32>,
    return
  }
  func.func @transform_0(%arg0: i32, %arg1: i32) -> (i32, i32) {
    %c0_i32 = arith.constant 0 : i32
    return %arg0, %arg1 : i32, i32
  }
  func.func @transform_1(%arg0: i32, %arg1: i32) -> (i32, i32) {
    %c0_i32 = arith.constant 0 : i32
    %c0_i32_0 = arith.constant 0 : i32
    return %arg0, %c0_i32 : i32, i32
  }
  func.func @transform_2(%arg0: i32, %arg1: i32) -> (i32, i32) {
    %c0_i32 = arith.constant 0 : i32
    return %arg0, %arg1 : i32, i32
  }
}

</mosaic_0001>

<bundles_post_ra>
// kernel: eca_forward.5
= control target key start
LH: loop header
LB: loop body
LE: loop exit
PB: predicated region body
PF: predicated region fallthrough
CT: control target
= control target key end

     0   :  { %v29_v0 = vmov 0   ;;  %s60_s1 = inlined_call_operand.vmem [shape: f32[8,1], index: 1, kind: input, shape index: {}]   ;;  %s61_s0 = inlined_call_operand.vmem [shape: f32[8,256], index: 0, kind: input, shape index: {}]   ;;  %s62_s2 = inlined_call_operand.vmem [shape: f32[8,256], index: 2, kind: output, shape index: {}]  }
   0x1   :  { %28 = vset.pattern.permute.xlu0 %v29_v0  ;;  %v13_v1 = vld [vmem:[%s60_s1] sm:$0xff]  ;;  %v12_v3 = vld [vmem:[%s61_s0 + $0x8] sm:$0xff] }
   0x2   :  { %16 = vperm.xlu0 %28, %v13_v1   ;;  %v11_v2 = vld [vmem:[%s61_s0] sm:$0xff] }
  0x81   :  { %v17_v4 = vpop.permute.xlu0 %16 }
  0x82   :  { %v19_v5 = vmul.f32 %v17_v4, %v11_v2  ;;  %v20_v6 = vmul.f32 %v17_v4, %v12_v3 }
  0x84   :  { %21 = vst [vmem:[%s62_s2] sm:$0xff] %v19_v5  ;;  %22 = vst [vmem:[%s62_s2 + $0x8] sm:$0xff] %v20_v6 }

// kernel: eca_forward.3
= control target key start
LH: loop header
LB: loop body
LE: loop exit
PB: predicated region body
PF: predicated region fallthrough
CT: control target
= control target key end

     0   :  { %vm12_vm0 = vcmask 7168   ;;  %v34_v2 = vmov 0.0   ;;  %s66_s0 = inlined_call_operand.vmem [shape: f32[8,256], index: 0, kind: input, shape index: {}]   ;;  %s67_s1 = inlined_call_operand.vmem [shape: f32[8,1], index: 1, kind: output, shape index: {}]  }
   0x1   :  { %v14_v0 = vld [vmem:[%s66_s0] sm:$0xff]  ;;  %v15_v1 = vld [vmem:[%s66_s0 + $0x8] sm:$0xff]  ;;  %13 = vst.msk [vmem:[%s67_s1] sm:$0xff] %vm12_vm0, %v34_v2 }
   0x2   :  { %v17_v3 = vadd.f32 %v15_v1, %v14_v0 }
   0x4   :  { %18 = vadd.xlane.f32.xlu0 %v17_v3 }
   0x8   :  { %v16_v4 = vld [vmem:[%s67_s1] sm:$0xff] }
  0x91   :  { %v19_v5 = vpop.xlane.xlu0 %18 }
  0x92   :  { %v20_v6 = vadd.f32 %v19_v5, %v16_v4 }
  0x94   :  { %22 = vst.msk [vmem:[%s67_s1] sm:$0xff] %vm12_vm0, %v20_v6 }
  0x9b   :  { %v26_v7 = vld [vmem:[%s67_s1] sm:$0xff] }
  0x9c   :  { %v27_v8 = vmul.f32 0.00390625, %v26_v7 }
  0x9e   :  { %28 = vst.msk [vmem:[%s67_s1] sm:$0xff] %vm12_vm0, %v27_v8 }

// kernel: eca_forward.4
= control target key start
LH: loop header
LB: loop body
LE: loop exit
PB: predicated region body
PF: predicated region fallthrough
CT: control target
= control target key end

     0   :  { %7 = vsyncpa [#allocation3], 0  ;;  %s109_s0 = inlined_call_operand.vmem [shape: f32[2,6], index: 0, kind: input, shape index: {}]   ;;  %s110_s1 = inlined_call_operand.vmem [shape: f32[3], index: 1, kind: input, shape index: {}]   ;;  %s111_s2 = inlined_call_operand.vmem [shape: f32[2,4], index: 2, kind: output, shape index: {}]  }
   0x1   :  { %s16_s11 = sshll.u32 %s110_s1, 4  ;;  %s17_s11 = int_to_ptr.vmem [resolvable:$true] %s16_s11 }
   0x2   :  { %s68_s12 = scalar_lea.vmem %s17_s11, 16  ;;  %p73_p1 = scmp.lt.s32.totalorder %s17_s11, %s17_s11 }
   0x3   :  { %p69_p0 = scmp.ne.s32.totalorder %s17_s11, %s68_s12  ;;  %p74_p2 = scmp.lt.s32.totalorder %s68_s12, %s68_s12 }
   0x5   :  { %p75_p3 = por %p74_p2, %p73_p1 }
   0x7   :  { %p76_p4 = pnand %p75_p3, %p69_p0 }
   0x9   :  { %79 = shalt.err (!%p76_p4)
}
   0xa   :  { %s82_s13 = smov [#allocation2]  }
   0xb   :  { %19 = dma.vmem_to_smem %s17_s11, 16, %s82_s13, [#allocation3]  }
   0xc   :  { %80 = dma.done.wait [#allocation3], 16  }
   0xd   :  { %81 = vsyncadd [#allocation3], 4294967280 }
   0xe   :  { %23 = sfence }
   0xf   :  { %s58_s14 = sld [smem:[#allocation2 + $0x1]]  ;;  %s59_s15 = sld [smem:[#allocation2 + $0x2]]  ;;  %v25_v0 = vld [vmem:[%s109_s0] sm:$0x3]  ;;  %vm51_vm0 = vcmask 25600  }
  0x10   :  { %s83_s1 = smov 127   ;;  %s84_s18 = smov 126  }
  0x11   :  { %s24_s19 = sld [smem:[#allocation2]] }
  0x15   :  { %v30_v1 = vstv %s58_s14  ;;  %v38_v3 = vstv %s59_s15 }
  0x16   :  { %v31_v2 = vmul.f32 %v30_v1, %v25_v0  ;;  %v39_v4 = vmul.f32 %v38_v3, %v25_v0 }
  0x17   :  { %v26_v5 = vstv %s24_s19 }
  0x18   :  { %33 = vrot.lane.b32.xlu0 %v31_v2, %s83_s1  ;;  %v27_v6 = vmul.f32 %v26_v5, %v25_v0 }
  0x1c   :  { %41 = vrot.lane.b32.xlu0 %v39_v4, %s84_s18 }
  0x8a   :  { %v34_v7 = vpop.permute.xlu0 %33 }
  0x8b   :  { %v36_v8 = vadd.f32 %v34_v7, %v27_v6 }
  0x8e   :  { %v42_v9 = vpop.permute.xlu0 %41 }
  0x8f   :  { %v44_v10 = vadd.f32 %v42_v9, %v36_v8 }
  0x91   :  { %v60_v11 = vmul.f32 -1.442695, %v44_v10 }
  0x93   :  { %64 = vpow2.f32 %v60_v11 }
  0x9d   :  { %v65_v12 = vpop.eup %64 }
  0x9e   :  { %v48_v13 = vadd.f32 1.0, %v65_v12 }
  0xa0   :  { %66 = vrcp.f32 %v48_v13 }
  0xaa   :  { %v67_v14 = vpop.eup %66 }
  0xab   :  { %52 = vst.msk [vmem:[%s111_s2] sm:$0x3] %vm51_vm0, %v67_v14 }
  0xac   :  { %57 = vsyncpa [#allocation3], 1 }

</bundles_post_ra>
